<compile_context>
chip_gen: v6e
topology: v6e:2x2x1
jax: 0.10.0
libtpu: 0.0.40
codegen_flags: <defaults>
</compile_context>

<pallas_src>
import jax
import jax.numpy as jnp
from jax import lax
from jax.experimental import pallas as pl
from jax.experimental.pallas import tpu as pltpu


def _make_mlp_kernel(num_hidden_layers: int):
    """Fused MLP kernel body for a fixed number of hidden layers.

    Refs:
      refs[0]   : x tile, row-major [tile_m, C_in] float32 (straight from HBM).
      refs[1:-1]: (w, b) pairs; w is PyTorch-layout [C_out, C_in] bf16 (BN folded),
                  b is [C_out, 1] float32.
      refs[-1]  : output tile, feature-major [C_out, tile_m] float32 (lane-dense).
    """

    def kernel(*refs):
        x_ref = refs[0]
        out_ref = refs[-1]
        params = refs[1:-1]

        # In-kernel bf16 cast (no wrapper-side cast/transpose dispatches).
        x_bf = x_ref[...].astype(jnp.bfloat16)            # [tile_m, C_in]

        idx = 0
        h = None                                          # feature-major [C, tile_m] bf16
        for li in range(num_hidden_layers):
            w_ref, b_ref = params[idx], params[idx + 1]
            idx += 2
            if li == 0:
                # einsum('oc,mc->om'): contract the shared feature axis of
                # W [C_out, C_in] and x [tile_m, C_in] -> feature-major [C_out, tile_m].
                # The operand relayout rides the MXU/XLU path in-kernel.
                acc = lax.dot_general(
                    w_ref[...], x_bf,
                    dimension_numbers=(((1,), (1,)), ((), ())),
                    preferred_element_type=jnp.float32)
            else:
                acc = jnp.dot(w_ref[...], h, preferred_element_type=jnp.float32)
            acc = acc + b_ref[...]          # bias [C,1] -> broadcast over lanes, f32
            acc = jnp.maximum(acc, 0.0)     # ReLU in f32 (v5e VPU has no bf16)
            # Dropout: identity in eval mode.
            h = acc.astype(jnp.bfloat16)

        # Final Linear (no BN / ReLU / dropout).
        w_ref, b_ref = params[idx], params[idx + 1]
        if num_hidden_layers == 0:
            y = lax.dot_general(w_ref[...], x_bf,
                                dimension_numbers=(((1,), (1,)), ((), ())),
                                preferred_element_type=jnp.float32) + b_ref[...]
        else:
            y = jnp.dot(w_ref[...], h, preferred_element_type=jnp.float32) + b_ref[...]
        out_ref[...] = y.astype(out_ref.dtype)   # lane-dense store (last dim = tile_m)

    return kernel


def _default_tile_m(n_rows: int) -> int:
    """Generation-aware row-tile.

    v5e/v6e (1 TensorCore/chip): one grid step (tile_m = N, capped at 1024 to keep
    vreg/VMEM pressure sane).  v7x (2 TCs/chip): exactly two steps so both cores
    get a tile via dimension_semantics=("parallel",).
    """
    assert n_rows % 128 == 0, n_rows
    try:
        kind = jax.devices()[0].device_kind.lower()
    except Exception:  # pragma: no cover - detection failure -> safe default
        kind = ""
    two_tensorcores = "v7" in kind
    candidates = [t for t in (1024, 512, 256, 128) if n_rows % t == 0]
    if two_tensorcores:
        for t in candidates:
            if n_rows // t >= 2:
                return t
        return candidates[-1]
    return candidates[0]


def mlp_pallas(x, weights, biases, bn_params, *, tile_m=None):
    """Run the fused MLP (eval mode).

    Args:
      x: [N, C_in] float32, row-major (consumed directly, no host-side relayout).
      weights: list of PyTorch-layout Linear weights [C_out, C_in].
      biases:  list of Linear biases [C_out].
      bn_params: list of (gamma, beta, running_mean, running_var, eps) per hidden layer.
      tile_m: optional row-tile override; multiple of 128 dividing N.
    Returns:
      [N, C_out] float32.
    """
    N, c_in = x.shape
    num_layers = len(weights)
    num_hidden = num_layers - 1
    assert num_layers >= 1
    assert len(biases) == num_layers
    assert len(bn_params) == num_hidden

    if tile_m is None:
        tile_m = _default_tile_m(N)
    assert tile_m % 128 == 0 and N % tile_m == 0, (N, tile_m)

    # ---- host-side parameter prep: fold BN into W/b, cast matmul operands to bf16 ----
    flat_params = []
    for li in range(num_hidden):
        w = weights[li].astype(jnp.float32)
        b = biases[li].astype(jnp.float32)
        gamma, beta, mean, var, eps = bn_params[li]
        scale = gamma / jnp.sqrt(var + eps)
        shift = beta - mean * scale
        w_folded = (w * scale[:, None]).astype(jnp.bfloat16)               # [cout, cin]
        b_folded = (b * scale + shift).astype(jnp.float32).reshape(-1, 1)  # [cout, 1]
        flat_params += [w_folded, b_folded]
    flat_params += [
        weights[-1].astype(jnp.bfloat16),
        biases[-1].astype(jnp.float32).reshape(-1, 1),
    ]
    c_out = weights[-1].shape[0]

    grid = (N // tile_m,)

    # x read row-major straight from HBM: block (tile_m, c_in); last dim == full dim.
    in_specs = [pl.BlockSpec((tile_m, c_in), lambda i: (i, 0))]
    for p in flat_params:
        # Full-array blocks, constant index map (params logically resident; at
        # grid <= 2 steps re-DMA / double-buffering cost is negligible).
        in_specs.append(pl.BlockSpec(p.shape, lambda i: (0, 0)))
    # Feature-major output: last dim = tile_m -> unmasked lane-dense stores.
    out_specs = pl.BlockSpec((c_out, tile_m), lambda i: (0, i))

    # Advisory cost hint for XLA scheduling.
    flops = int(2 * N * sum(int(w.shape[0]) * int(w.shape[1]) for w in weights))
    bytes_accessed = int(
        x.size * x.dtype.itemsize
        + N * c_out * 4
        + sum(int(p.size) * p.dtype.itemsize for p in flat_params)
    )
    cost = pl.CostEstimate(flops=flops, transcendentals=0,
                           bytes_accessed=bytes_accessed)

    out_t = pl.pallas_call(
        _make_mlp_kernel(num_hidden),
        grid=grid,
        in_specs=in_specs,
        out_specs=out_specs,
        out_shape=jax.ShapeDtypeStruct((c_out, N), jnp.float32),
        compiler_params=pltpu.CompilerParams(
            dimension_semantics=("parallel",),
            vmem_limit_bytes=32 * 1024 * 1024,
        ),
        cost_estimate=cost,
    )(x, *flat_params)

    # Match the PyTorch module's [N, C_out] contract (single tiny transpose of
    # a [C_out, N] slab; drop it if a feature-major output is acceptable).
    return out_t.T


def mlp_reference(x, weights, biases, bn_params):
    """Pure-JAX eval-mode reference (unfolded BN; bf16 matmul inputs like the kernel)."""
    h = x
    num_hidden = len(weights) - 1
    for li in range(num_hidden):
        w, b = weights[li], biases[li]
        gamma, beta, mean, var, eps = bn_params[li]
        h = jnp.dot(h.astype(jnp.bfloat16), w.astype(jnp.bfloat16).T,
                    preferred_element_type=jnp.float32) + b
        h = (h - mean) / jnp.sqrt(var + eps) * gamma + beta   # BatchNorm1d (eval)
        h = jnp.maximum(h, 0.0)                               # ReLU (dropout = identity)
    y = jnp.dot(h.astype(jnp.bfloat16), weights[-1].astype(jnp.bfloat16).T,
                preferred_element_type=jnp.float32) + biases[-1]
    return y


if __name__ == "__main__":
    # Module hyperparameters (small, consistent with the PyTorch module).
    in_channels = 16
    hidden_channels = 32
    out_channels = 8
    num_layers = 3          # -> 2 hidden (Linear+BN+ReLU+Dropout) blocks + 1 output Linear
    dropout_p = 0.5         # identity in eval mode
    eps = 1e-5              # BatchNorm1d default eps
    N = 1024                # number of rows (nodes / samples)

    key = jax.random.PRNGKey(0)

    dims = [in_channels] + [hidden_channels] * (num_layers - 1) + [out_channels]
    weights, biases, bn_params = [], [], []
    for li in range(num_layers):
        cin, cout = dims[li], dims[li + 1]
        key, kw, kb = jax.random.split(key, 3)
        bound = 1.0 / (cin ** 0.5)
        # PyTorch Linear layout: weight [cout, cin], bias [cout].
        w = jax.random.uniform(kw, (cout, cin), jnp.float32, -bound, bound)
        b = jax.random.uniform(kb, (cout,), jnp.float32, -bound, bound)
        weights.append(w)
        biases.append(b)
        if li < num_layers - 1:
            key, kg, kbeta, km, kv = jax.random.split(key, 5)
            gamma = 1.0 + 0.1 * jax.random.normal(kg, (cout,), jnp.float32)
            beta = 0.1 * jax.random.normal(kbeta, (cout,), jnp.float32)
            run_mean = 0.1 * jax.random.normal(km, (cout,), jnp.float32)
            run_var = 1.0 + 0.1 * jax.random.uniform(kv, (cout,), jnp.float32)
            bn_params.append((gamma, beta, run_mean, run_var, eps))

    key, kx = jax.random.split(key)
    x = jax.random.normal(kx, (N, in_channels), jnp.float32)

    out = mlp_pallas(x, weights, biases, bn_params)   # tile_m auto (generation-aware)
    out = jax.block_until_ready(out)

    ref = mlp_reference(x, weights, biases, bn_params)

    assert out.shape == (N, out_channels)
    # Tolerance accounts for bf16 weight quantization (kernel folds BN into W before
    # the bf16 cast; reference applies BN separately) — identical eval-mode math.
    assert jnp.allclose(out, ref, atol=5e-2, rtol=5e-2), float(jnp.max(jnp.abs(out - ref)))

    print("KERNEL_OK")
</pallas_src>

<mosaic_0001>
module attributes {stable_mosaic.version = 11 : i64} {
  func.func @kernel(%arg0: i32, %arg1: memref<1024x16xf32, #tpu.memory_space<vmem>>, %arg2: memref<32x16xbf16, #tpu.memory_space<vmem>>, %arg3: memref<32x1xf32, #tpu.memory_space<vmem>>, %arg4: memref<32x32xbf16, #tpu.memory_space<vmem>>, %arg5: memref<32x1xf32, #tpu.memory_space<vmem>>, %arg6: memref<8x32xbf16, #tpu.memory_space<vmem>>, %arg7: memref<8x1xf32, #tpu.memory_space<vmem>>, %arg8: memref<8x1024xf32, #tpu.memory_space<vmem>>) attributes {dimension_semantics = [#tpu.dimension_semantics<parallel>], iteration_bounds = array<i64: 1>, scalar_prefetch = 0 : i64, scratch_operands = 0 : i64, tpu.core_type = #tpu.core_type<tc>, window_params = [{transform_indices = @transform_0, window_bounds = array<i64: 1024, 16>}, {pipeline_mode = #tpu.pipeline_mode<synchronous>, transform_indices = @transform_1, window_bounds = array<i64: 32, 16>}, {pipeline_mode = #tpu.pipeline_mode<synchronous>, transform_indices = @transform_2, window_bounds = array<i64: 32, 1>}, {pipeline_mode = #tpu.pipeline_mode<synchronous>, transform_indices = @transform_3, window_bounds = array<i64: 32, 32>}, {pipeline_mode = #tpu.pipeline_mode<synchronous>, transform_indices = @transform_4, window_bounds = array<i64: 32, 1>}, {pipeline_mode = #tpu.pipeline_mode<synchronous>, transform_indices = @transform_5, window_bounds = array<i64: 8, 32>}, {pipeline_mode = #tpu.pipeline_mode<synchronous>, transform_indices = @transform_6, window_bounds = array<i64: 8, 1>}, {transform_indices = @transform_7, window_bounds = array<i64: 8, 1024>}]} {
    %c0 = arith.constant 0 : index
    %c0_0 = arith.constant 0 : index
    %0 = vector.load %arg1[%c0, %c0_0] : memref<1024x16xf32, #tpu.memory_space<vmem>>, vector<1024x16xf32>
    %1 = arith.truncf %0 : vector<1024x16xf32> to vector<1024x16xbf16>
    %c0_1 = arith.constant 0 : index
    %c0_2 = arith.constant 0 : index
    %2 = vector.load %arg2[%c0_1, %c0_2] : memref<32x16xbf16, #tpu.memory_space<vmem>>, vector<32x16xbf16>
    %cst = arith.constant dense<0.000000e+00> : vector<32x1024xf32>
    %3 = tpu.matmul %2, %1, %cst {dimension_numbers = #tpu.dot_dimension_numbers<[1], [1], [0], [0], [0, 0, 1, 0], [], []>} : vector<32x16xbf16>, vector<1024x16xbf16>, vector<32x1024xf32> -> vector<32x1024xf32>
    %c0_3 = arith.constant 0 : index
    %c0_4 = arith.constant 0 : index
    %4 = vector.load %arg3[%c0_3, %c0_4] : memref<32x1xf32, #tpu.memory_space<vmem>>, vector<32x1xf32>
    %5 = vector.broadcast %4 : vector<32x1xf32> to vector<32x1024xf32>
    %6 = arith.addf %3, %5 : vector<32x1024xf32>
    %cst_5 = arith.constant 0.000000e+00 : f32
    %7 = vector.broadcast %cst_5 : f32 to vector<32x1024xf32>
    %8 = arith.maximumf %6, %7 : vector<32x1024xf32>
    %9 = arith.truncf %8 : vector<32x1024xf32> to vector<32x1024xbf16>
    %c0_6 = arith.constant 0 : index
    %c0_7 = arith.constant 0 : index
    %10 = vector.load %arg4[%c0_6, %c0_7] : memref<32x32xbf16, #tpu.memory_space<vmem>>, vector<32x32xbf16>
    %cst_8 = arith.constant dense<0.000000e+00> : vector<32x1024xf32>
    %11 = tpu.matmul %10, %9, %cst_8 {dimension_numbers = #tpu.dot_dimension_numbers<[1], [0], [0], [1], [0, 0, 1, 1], [], []>} : vector<32x32xbf16>, vector<32x1024xbf16>, vector<32x1024xf32> -> vector<32x1024xf32>
    %c0_9 = arith.constant 0 : index
    %c0_10 = arith.constant 0 : index
    %12 = vector.load %arg5[%c0_9, %c0_10] : memref<32x1xf32, #tpu.memory_space<vmem>>, vector<32x1xf32>
    %13 = vector.broadcast %12 : vector<32x1xf32> to vector<32x1024xf32>
    %14 = arith.addf %11, %13 : vector<32x1024xf32>
    %cst_11 = arith.constant 0.000000e+00 : f32
    %15 = vector.broadcast %cst_11 : f32 to vector<32x1024xf32>
    %16 = arith.maximumf %14, %15 : vector<32x1024xf32>
    %17 = arith.truncf %16 : vector<32x1024xf32> to vector<32x1024xbf16>
    %c0_12 = arith.constant 0 : index
    %c0_13 = arith.constant 0 : index
    %18 = vector.load %arg6[%c0_12, %c0_13] : memref<8x32xbf16, #tpu.memory_space<vmem>>, vector<8x32xbf16>
    %cst_14 = arith.constant dense<0.000000e+00> : vector<8x1024xf32>
    %19 = tpu.matmul %18, %17, %cst_14 {dimension_numbers = #tpu.dot_dimension_numbers<[1], [0], [0], [1], [0, 0, 1, 1], [], []>} : vector<8x32xbf16>, vector<32x1024xbf16>, vector<8x1024xf32> -> vector<8x1024xf32>
    %c0_15 = arith.constant 0 : index
    %c0_16 = arith.constant 0 : index
    %20 = vector.load %arg7[%c0_15, %c0_16] : memref<8x1xf32, #tpu.memory_space<vmem>>, vector<8x1xf32>
    %21 = vector.broadcast %20 : vector<8x1xf32> to vector<8x1024xf32>
    %22 = arith.addf %19, %21 : vector<8x1024xf32>
    %c0_17 = arith.constant 0 : index
    %c0_18 = arith.constant 0 : index
    %23 = vector.load %arg8[%c0_17, %c0_18] : memref<8x1024xf32, #tpu.memory_space<vmem>>, vector<8x1024xf32>
    tpu.vector_store %arg8[%c0_17, %c0_18], %22 {strides = array<i32>} : memref<8x1024xf32, #tpu.memory_space<vmem>>, vector<8x1024xf32>,
    return
  }
  func.func @transform_0(%arg0: i32) -> (i32, i32) {
    %c0_i32 = arith.constant 0 : i32
    %c0_i32_0 = arith.constant 0 : i32
    return %arg0, %c0_i32 : i32, i32
  }
  func.func @transform_1(%arg0: i32) -> (i32, i32) {
    %c0_i32 = arith.constant 0 : i32
    %c0_i32_0 = arith.constant 0 : i32
    %c0_i32_1 = arith.constant 0 : i32
    return %c0_i32, %c0_i32_0 : i32, i32
  }
  func.func @transform_2(%arg0: i32) -> (i32, i32) {
    %c0_i32 = arith.constant 0 : i32
    %c0_i32_0 = arith.constant 0 : i32
    %c0_i32_1 = arith.constant 0 : i32
    return %c0_i32, %c0_i32_0 : i32, i32
  }
  func.func @transform_3(%arg0: i32) -> (i32, i32) {
    %c0_i32 = arith.constant 0 : i32
    %c0_i32_0 = arith.constant 0 : i32
    %c0_i32_1 = arith.constant 0 : i32
    return %c0_i32, %c0_i32_0 : i32, i32
  }
  func.func @transform_4(%arg0: i32) -> (i32, i32) {
    %c0_i32 = arith.constant 0 : i32
    %c0_i32_0 = arith.constant 0 : i32
    %c0_i32_1 = arith.constant 0 : i32
    return %c0_i32, %c0_i32_0 : i32, i32
  }
  func.func @transform_5(%arg0: i32) -> (i32, i32) {
    %c0_i32 = arith.constant 0 : i32
    %c0_i32_0 = arith.constant 0 : i32
    %c0_i32_1 = arith.constant 0 : i32
    return %c0_i32, %c0_i32_0 : i32, i32
  }
  func.func @transform_6(%arg0: i32) -> (i32, i32) {
    %c0_i32 = arith.constant 0 : i32
    %c0_i32_0 = arith.constant 0 : i32
    %c0_i32_1 = arith.constant 0 : i32
    return %c0_i32, %c0_i32_0 : i32, i32
  }
  func.func @transform_7(%arg0: i32) -> (i32, i32) {
    %c0_i32 = arith.constant 0 : i32
    %c0_i32_0 = arith.constant 0 : i32
    return %c0_i32, %arg0 : i32, i32
  }
}

</mosaic_0001>

<bundles_post_ra>
// kernel: tpu_custom_call.1
= control target key start
LH: loop header
LB: loop body
LE: loop exit
PB: predicated region body
PF: predicated region fallthrough
CT: control target
= control target key end

     0   :  { %vm258_vm0 = vcmask 130048   ;;  %v1384_v28 = vmov 0   ;;  %s2079_s0 = inlined_call_operand.vmem [shape: f32[1024,16], index: 0, kind: input, shape index: {}]   ;;  %s2080_s1 = inlined_call_operand.vmem [shape: bf16[32,16], index: 1, kind: input, shape index: {}]   ;;  %s2081_s2 = inlined_call_operand.vmem [shape: f32[32,1], index: 2, kind: input, shape index: {}]   ;;  %s2082_s3 = inlined_call_operand.vmem [shape: bf16[32,32], index: 3, kind: input, shape index: {}]   ;;  %s2083_s4 = inlined_call_operand.vmem [shape: f32[32,1], index: 4, kind: input, shape index: {}]   ;;  %s2084_s5 = inlined_call_operand.vmem [shape: bf16[8,32], index: 5, kind: input, shape index: {}]   ;;  %s2085_s6 = inlined_call_operand.vmem [shape: f32[8,1], index: 6, kind: input, shape index: {}]   ;;  %s2086_s7 = inlined_call_operand.hbm [shape: f32[8,1024], index: 7, kind: output, shape index: {}]  }
   0x1   :  { %v58_v0 = vld [vmem:[%s2079_s0 + $0xf0] sm:$0xff]  ;;  %v59_v1 = vld [vmem:[%s2079_s0 + $0xf8] sm:$0xff]  ;;  %v56_v11 = vld [vmem:[%s2079_s0 + $0xe0] sm:$0xff]  ;;  %1357 = vset.pattern.permute.xlu1 %v1384_v28  ;;  %1356 = vset.pattern.permute.xlu0 %v1384_v28 }
   0x2   :  { %v90_v2 = vld [vmem:[%s2079_s0 + $0x1f0] sm:$0xff]  ;;  %v171_v3 = vpack.c.bf16 %v59_v1, %v58_v0  ;;  %v91_v4 = vld [vmem:[%s2079_s0 + $0x1f8] sm:$0xff]  ;;  %v57_v13 = vld [vmem:[%s2079_s0 + $0xe8] sm:$0xff] }
   0x3   :  { %v42_v5 = vld [vmem:[%s2079_s0 + $0x70] sm:$0xff]  ;;  %v43_v6 = vld [vmem:[%s2079_s0 + $0x78] sm:$0xff]  ;;  %v187_v7 = vpack.c.bf16 %v91_v4, %v90_v2  ;;  %v88_v14 = vld [vmem:[%s2079_s0 + $0x1e0] sm:$0xff]  ;;  %v170_v17 = vpack.c.bf16 %v57_v13, %v56_v11 }
   0x4   :  { %v163_v8 = vpack.c.bf16 %v43_v6, %v42_v5  ;;  %v74_v9 = vld [vmem:[%s2079_s0 + $0x170] sm:$0xff]  ;;  %v75_v10 = vld [vmem:[%s2079_s0 + $0x178] sm:$0xff]  ;;  %1322 = vmatprep.subr.msk.bf16.mxu0 %vm258_vm0, %v171_v3  ;;  %v89_v15 = vld [vmem:[%s2079_s0 + $0x1e8] sm:$0xff] }
   0x5   :  { %v179_v12 = vpack.c.bf16 %v75_v10, %v74_v9  ;;  %1330 = vmatprep.subr.msk.bf16.mxu1 %vm258_vm0, %v187_v7  ;;  %v186_v18 = vpack.c.bf16 %v89_v15, %v88_v14  ;;  %v40_v19 = vld [vmem:[%s2079_s0 + $0x60] sm:$0xff]  ;;  %v41_v20 = vld [vmem:[%s2079_s0 + $0x68] sm:$0xff]  ;;  %v54_v26 = vld [vmem:[%s2079_s0 + $0xd0] sm:$0xff] }
   0x6   :  { %v287_v16 = vsel %vm258_vm0, %v163_v8, 0  ;;  %v72_v21 = vld [vmem:[%s2079_s0 + $0x160] sm:$0xff]  ;;  %v73_v23 = vld [vmem:[%s2079_s0 + $0x168] sm:$0xff]  ;;  %v162_v24 = vpack.c.bf16 %v41_v20, %v40_v19  ;;  %v55_v27 = vld [vmem:[%s2079_s0 + $0xd8] sm:$0xff] }
   0x7   :  { %1243 = vmatpush3.bf16.xpose.msra.mxu0 %v287_v16  ;;  %v335_v22 = vsel %vm258_vm0, %v179_v12, 0  ;;  %v178_v25 = vpack.c.bf16 %v73_v23, %v72_v21  ;;  %v86_v29 = vld [vmem:[%s2079_s0 + $0x1d0] sm:$0xff]  ;;  %v87_v30 = vld [vmem:[%s2079_s0 + $0x1d8] sm:$0xff]  ;;  %v169_v32 = vpack.c.bf16 %v55_v27, %v54_v26  ;;  %v52_v41 = vld [vmem:[%s2079_s0 + $0xc0] sm:$0xff] }
   0x8   :  { %1263 = vmatpush3.bf16.xpose.msra.mxu1 %v335_v22  ;;  %1323 = vmatprep.subr.msk.bf16.mxu0 %vm258_vm0, %v170_v17  ;;  %v284_v31 = vsel %vm258_vm0, %v162_v24, 0  ;;  %v185_v34 = vpack.c.bf16 %v87_v30, %v86_v29  ;;  %v38_v35 = vld [vmem:[%s2079_s0 + $0x50] sm:$0xff]  ;;  %v39_v36 = vld [vmem:[%s2079_s0 + $0x58] sm:$0xff]  ;;  %v53_v42 = vld [vmem:[%s2079_s0 + $0xc8] sm:$0xff] }
   0x9   :  { %1331 = vmatprep.subr.msk.bf16.mxu1 %vm258_vm0, %v186_v18  ;;  %v332_v33 = vsel %vm258_vm0, %v178_v25, 0  ;;  %v70_v37 = vld [vmem:[%s2079_s0 + $0x150] sm:$0xff]  ;;  %v71_v38 = vld [vmem:[%s2079_s0 + $0x158] sm:$0xff]  ;;  %v161_v39 = vpack.c.bf16 %v39_v36, %v38_v35  ;;  %v84_v43 = vld [vmem:[%s2079_s0 + $0x1c0] sm:$0xff]  ;;  %v168_v46 = vpack.c.bf16 %v53_v42, %v52_v41 }
   0xa   :  { %v177_v40 = vpack.c.bf16 %v71_v38, %v70_v37  ;;  %v85_v44 = vld [vmem:[%s2079_s0 + $0x1c8] sm:$0xff]  ;;  %v36_v49 = vld [vmem:[%s2079_s0 + $0x40] sm:$0xff]  ;;  %v50_v56 = vld [vmem:[%s2079_s0 + $0xb0] sm:$0xff] }
   0xb   :  { %v281_v45 = vsel %vm258_vm0, %v161_v39, 0  ;;  %v184_v48 = vpack.c.bf16 %v85_v44, %v84_v43  ;;  %v37_v50 = vld [vmem:[%s2079_s0 + $0x48] sm:$0xff]  ;;  %v68_v51 = vld [vmem:[%s2079_s0 + $0x140] sm:$0xff]  ;;  %v51_v57 = vld [vmem:[%s2079_s0 + $0xb8] sm:$0xff] }
   0xc   :  { %v329_v47 = vsel %vm258_vm0, %v177_v40, 0  ;;  %v69_v52 = vld [vmem:[%s2079_s0 + $0x148] sm:$0xff]  ;;  %v160_v53 = vpack.c.bf16 %v37_v50, %v36_v49  ;;  %v1540_v54 = vld [vmem:[%s2080_s1] sm:$0xff]   ;;  %v82_v58 = vld [vmem:[%s2079_s0 + $0x1b0] sm:$0xff]  ;;  %v167_v61 = vpack.c.bf16 %v51_v57, %v50_v56 }
   0xd   :  { %v176_v55 = vpack.c.bf16 %v69_v52, %v68_v51  ;;  %v83_v59 = vld [vmem:[%s2079_s0 + $0x1b8] sm:$0xff]  ;;  %1258 = vmatprep.mubr.msk.bf16.mxu0 %vm258_vm0, %v1540_v54  ;;  %1278 = vmatprep.mubr.msk.bf16.mxu1 %vm258_vm0, %v1540_v54  ;;  %v34_v0 = vld [vmem:[%s2079_s0 + $0x30] sm:$0xff]  ;;  %v48_v6 = vld [vmem:[%s2079_s0 + $0xa0] sm:$0xff] }
   0xe   :  { %v278_v60 = vsel %vm258_vm0, %v160_v53, 0  ;;  %v183_v63 = vpack.c.bf16 %v83_v59, %v82_v58  ;;  %v35_v1 = vld [vmem:[%s2079_s0 + $0x38] sm:$0xff]  ;;  %v66_v2 = vld [vmem:[%s2079_s0 + $0x130] sm:$0xff]  ;;  %v49_v7 = vld [vmem:[%s2079_s0 + $0xa8] sm:$0xff] }
   0xf   :  { %1245 = vmatpush3.bf16.xpose.msra.mxu0 %v284_v31  ;;  %v326_v62 = vsel %vm258_vm0, %v176_v55, 0  ;;  %v67_v3 = vld [vmem:[%s2079_s0 + $0x138] sm:$0xff]  ;;  %v159_v4 = vpack.c.bf16 %v35_v1, %v34_v0  ;;  %v80_v8 = vld [vmem:[%s2079_s0 + $0x1a0] sm:$0xff]  ;;  %v81_v9 = vld [vmem:[%s2079_s0 + $0x1a8] sm:$0xff]  ;;  %v166_v11 = vpack.c.bf16 %v49_v7, %v48_v6 }
  0x10   :  { %1265 = vmatpush3.bf16.xpose.msra.mxu1 %v332_v33  ;;  %1324 = vmatprep.subr.msk.bf16.mxu0 %vm258_vm0, %v169_v32  ;;  %v175_v5 = vpack.c.bf16 %v67_v3, %v66_v2  ;;  %v182_v13 = vpack.c.bf16 %v81_v9, %v80_v8  ;;  %v32_v14 = vld [vmem:[%s2079_s0 + $0x20] sm:$0xff]  ;;  %v33_v15 = vld [vmem:[%s2079_s0 + $0x28] sm:$0xff]  ;;  %v46_v20 = vld [vmem:[%s2079_s0 + $0x90] sm:$0xff] }
  0x11   :  { %1332 = vmatprep.subr.msk.bf16.mxu1 %vm258_vm0, %v185_v34  ;;  %v275_v10 = vsel %vm258_vm0, %v159_v4, 0  ;;  %v64_v16 = vld [vmem:[%s2079_s0 + $0x120] sm:$0xff]  ;;  %v65_v17 = vld [vmem:[%s2079_s0 + $0x128] sm:$0xff]  ;;  %v158_v18 = vpack.c.bf16 %v33_v15, %v32_v14  ;;  %v47_v21 = vld [vmem:[%s2079_s0 + $0x98] sm:$0xff] }
  0x12   :  { %v323_v12 = vsel %vm258_vm0, %v175_v5, 0  ;;  %v174_v19 = vpack.c.bf16 %v65_v17, %v64_v16  ;;  %v78_v22 = vld [vmem:[%s2079_s0 + $0x190] sm:$0xff]  ;;  %v79_v23 = vld [vmem:[%s2079_s0 + $0x198] sm:$0xff]  ;;  %v165_v25 = vpack.c.bf16 %v47_v21, %v46_v20  ;;  %v224_v33 = vld [vmem:[%s2081_s2] sm:$0xff] }
  0x13   :  { %v272_v24 = vsel %vm258_vm0, %v158_v18, 0  ;;  %v181_v27 = vpack.c.bf16 %v79_v23, %v78_v22  ;;  %v30_v29 = vld [vmem:[%s2079_s0 + $0x10] sm:$0xff]  ;;  %v31_v30 = vld [vmem:[%s2079_s0 + $0x18] sm:$0xff]  ;;  %v44_v34 = vld [vmem:[%s2079_s0 + $0x80] sm:$0xff]  ;;  %230 = vperm.xlu1 %1357, %v224_v33  }
  0x14   :  { %v320_v26 = vsel %vm258_vm0, %v174_v19, 0  ;;  %v62_v31 = vld [vmem:[%s2079_s0 + $0x110] sm:$0xff]  ;;  %v63_v32 = vld [vmem:[%s2079_s0 + $0x118] sm:$0xff]  ;;  %v157_v36 = vpack.c.bf16 %v31_v30, %v30_v29  ;;  %v45_v37 = vld [vmem:[%s2079_s0 + $0x88] sm:$0xff] }
  0x15   :  { %v226_v35 = vld [vmem:[%s2081_s2 + $0x10] sm:$0xff]  ;;  %v76_v38 = vld [vmem:[%s2079_s0 + $0x180] sm:$0xff]  ;;  %v225_v39 = vld [vmem:[%s2081_s2 + $0x8] sm:$0xff]  ;;  %v173_v40 = vpack.c.bf16 %v63_v32, %v62_v31 }
  0x16   :  { %v77_v41 = vld [vmem:[%s2079_s0 + $0x188] sm:$0xff]  ;;  %240 = vperm.xlu0 %1356, %v226_v35   ;;  %v227_v42 = vld [vmem:[%s2081_s2 + $0x18] sm:$0xff] }
  0x17   :  { %1247 = vmatpush3.bf16.xpose.msra.mxu0 %v281_v45  ;;  %235 = vperm.xlu1 %1357, %v225_v39  }
  0x18   :  { %1267 = vmatpush3.bf16.xpose.msra.mxu1 %v329_v47  ;;  %1325 = vmatprep.subr.msk.bf16.mxu0 %vm258_vm0, %v168_v46 }
  0x19   :  { %1333 = vmatprep.subr.msk.bf16.mxu1 %vm258_vm0, %v184_v48 }
  0x1f   :  { %1249 = vmatpush3.bf16.xpose.msra.mxu0 %v278_v60 }
  0x20   :  { %1269 = vmatpush3.bf16.xpose.msra.mxu1 %v326_v62  ;;  %1326 = vmatprep.subr.msk.bf16.mxu0 %vm258_vm0, %v167_v61 }
  0x21   :  { %1334 = vmatprep.subr.msk.bf16.mxu1 %vm258_vm0, %v183_v63 }
  0x27   :  { %1251 = vmatpush3.bf16.xpose.msra.mxu0 %v275_v10 }
  0x28   :  { %1271 = vmatpush3.bf16.xpose.msra.mxu1 %v323_v12  ;;  %1327 = vmatprep.subr.msk.bf16.mxu0 %vm258_vm0, %v166_v11 }
  0x29   :  { %1335 = vmatprep.subr.msk.bf16.mxu1 %vm258_vm0, %v182_v13 }
  0x2f   :  { %1253 = vmatpush3.bf16.xpose.msra.mxu0 %v272_v24 }
  0x30   :  { %1273 = vmatpush3.bf16.xpose.msra.mxu1 %v320_v26  ;;  %1328 = vmatprep.subr.msk.bf16.mxu0 %vm258_vm0, %v165_v25 }
  0x31   :  { %1336 = vmatprep.subr.msk.bf16.mxu1 %vm258_vm0, %v181_v27 }
  0x32   :  { %12 = vsyncpa [#allocation3], 0  ;;  %v269_v43 = vsel %vm258_vm0, %v157_v36, 0  ;;  %v164_v44 = vpack.c.bf16 %v45_v37, %v44_v34  ;;  %v724_v45 = vld [vmem:[%s2083_s4 + $0x18] sm:$0xff]  ;;  %v317_v46 = vsel %vm258_vm0, %v173_v40, 0  ;;  %v180_v47 = vpack.c.bf16 %v77_v41, %v76_v38  ;;  %v28_v48 = vld [vmem:[%s2079_s0] sm:$0xff]  ;;  %245 = vperm.xlu0 %1356, %v227_v42  }
  0x33   :  { %v29_v49 = vld [vmem:[%s2079_s0 + $0x8] sm:$0xff]  ;;  %v60_v50 = vld [vmem:[%s2079_s0 + $0x100] sm:$0xff]  ;;  %v723_v52 = vld [vmem:[%s2083_s4 + $0x10] sm:$0xff]  ;;  %742 = vperm.xlu1 %1357, %v724_v45   ;;  %vm755_vm1 = vcmask 261120  }
  0x34   :  { %v61_v51 = vld [vmem:[%s2079_s0 + $0x108] sm:$0xff]  ;;  %v156_v53 = vpack.c.bf16 %v29_v49, %v28_v48  ;;  %v122_v57 = vld [vmem:[%s2079_s0 + $0x2f0] sm:$0xff]  ;;  %v123_v58 = vld [vmem:[%s2079_s0 + $0x2f8] sm:$0xff] }
  0x35   :  { %v722_v55 = vld [vmem:[%s2083_s4 + $0x8] sm:$0xff]  ;;  %v172_v56 = vpack.c.bf16 %v61_v51, %v60_v50  ;;  %v154_v59 = vld [vmem:[%s2079_s0 + $0x3f0] sm:$0xff]  ;;  %v155_v60 = vld [vmem:[%s2079_s0 + $0x3f8] sm:$0xff]  ;;  %v203_v63 = vpack.c.bf16 %v123_v58, %v122_v57 }
  0x36   :  { %737 = vperm.xlu0 %1356, %v723_v52   ;;  %v721_v61 = vld [vmem:[%s2083_s4] sm:$0xff]  ;;  %v266_v62 = vsel %vm258_vm0, %v156_v53, 0  ;;  %v219_v1 = vpack.c.bf16 %v155_v60, %v154_v59  ;;  %v106_v2 = vld [vmem:[%s2079_s0 + $0x270] sm:$0xff]  ;;  %v107_v3 = vld [vmem:[%s2079_s0 + $0x278] sm:$0xff] }
  0x37   :  { %1255 = vmatpush3.bf16.xpose.msra.mxu0 %v269_v43  ;;  %732 = vperm.xlu1 %1357, %v722_v55   ;;  %v314_v0 = vsel %vm258_vm0, %v172_v56, 0  ;;  %v138_v4 = vld [vmem:[%s2079_s0 + $0x370] sm:$0xff]  ;;  %v139_v5 = vld [vmem:[%s2079_s0 + $0x378] sm:$0xff]  ;;  %v1023_v6 = vld [vmem:[%s2085_s6] sm:$0xff]  ;;  %v195_v7 = vpack.c.bf16 %v107_v3, %v106_v2 }
  0x38   :  { %1275 = vmatpush3.bf16.xpose.msra.mxu1 %v317_v46  ;;  %1329 = vmatprep.subr.msk.bf16.mxu0 %vm258_vm0, %v164_v44  ;;  %v211_v8 = vpack.c.bf16 %v139_v5, %v138_v4  ;;  %v120_v9 = vld [vmem:[%s2079_s0 + $0x2e0] sm:$0xff]  ;;  %v121_v10 = vld [vmem:[%s2079_s0 + $0x2e8] sm:$0xff]  ;;  %v118_v24 = vld [vmem:[%s2079_s0 + $0x2d0] sm:$0xff] }
  0x39   :  { %1337 = vmatprep.subr.msk.bf16.mxu1 %vm258_vm0, %v180_v47  ;;  %v152_v11 = vld [vmem:[%s2079_s0 + $0x3e0] sm:$0xff]  ;;  %v153_v12 = vld [vmem:[%s2079_s0 + $0x3e8] sm:$0xff]  ;;  %v383_v13 = vsel %vm258_vm0, %v195_v7, 0  ;;  %v202_v16 = vpack.c.bf16 %v121_v10, %v120_v9  ;;  %v119_v25 = vld [vmem:[%s2079_s0 + $0x2d8] sm:$0xff] }
  0x3a   :  { %727 = vperm.xlu0 %1356, %v721_v61   ;;  %v1730_v14 = vld [vmem:[%s2080_s1 + $0x8] sm:$0xff]   ;;  %v431_v15 = vsel %vm258_vm0, %v211_v8, 0  ;;  %v104_v17 = vld [vmem:[%s2079_s0 + $0x260] sm:$0xff]  ;;  %v218_v19 = vpack.c.bf16 %v153_v12, %v152_v11  ;;  %v150_v26 = vld [vmem:[%s2079_s0 + $0x3d0] sm:$0xff]  ;;  %v201_v30 = vpack.c.bf16 %v119_v25, %v118_v24 }
  0x3b   :  { %v105_v18 = vld [vmem:[%s2079_s0 + $0x268] sm:$0xff]  ;;  %v136_v20 = vld [vmem:[%s2079_s0 + $0x360] sm:$0xff]  ;;  %v151_v27 = vld [vmem:[%s2079_s0 + $0x3d8] sm:$0xff] }
  0x3c   :  { %v137_v21 = vld [vmem:[%s2079_s0 + $0x368] sm:$0xff]  ;;  %v194_v22 = vpack.c.bf16 %v105_v18, %v104_v17  ;;  %v217_v32 = vpack.c.bf16 %v151_v27, %v150_v26  ;;  %v102_v33 = vld [vmem:[%s2079_s0 + $0x250] sm:$0xff]  ;;  %v103_v34 = vld [vmem:[%s2079_s0 + $0x258] sm:$0xff] }
  0x3d   :  { %v210_v23 = vpack.c.bf16 %v137_v21, %v136_v20  ;;  %v134_v35 = vld [vmem:[%s2079_s0 + $0x350] sm:$0xff]  ;;  %v135_v36 = vld [vmem:[%s2079_s0 + $0x358] sm:$0xff]  ;;  %v193_v37 = vpack.c.bf16 %v103_v34, %v102_v33  ;;  %v116_v39 = vld [vmem:[%s2079_s0 + $0x2c0] sm:$0xff] }
  0x3e   :  { %1026 = vperm.xlu0 %1356, %v1023_v6   ;;  %v380_v29 = vsel %vm258_vm0, %v194_v22, 0  ;;  %v209_v38 = vpack.c.bf16 %v135_v36, %v134_v35  ;;  %v117_v40 = vld [vmem:[%s2079_s0 + $0x2c8] sm:$0xff]  ;;  %v148_v41 = vld [vmem:[%s2079_s0 + $0x3c0] sm:$0xff]  ;;  %v114_v53 = vld [vmem:[%s2079_s0 + $0x2b0] sm:$0xff] }
  0x3f   :  { %1257 = vmatpush3.bf16.xpose.msra.mxu0 %v266_v62  ;;  %v428_v31 = vsel %vm258_vm0, %v210_v23, 0  ;;  %v149_v42 = vld [vmem:[%s2079_s0 + $0x3c8] sm:$0xff]  ;;  %v377_v43 = vsel %vm258_vm0, %v193_v37, 0  ;;  %v200_v44 = vpack.c.bf16 %v117_v40, %v116_v39  ;;  %v100_v47 = vld [vmem:[%s2079_s0 + $0x240] sm:$0xff]  ;;  %v115_v55 = vld [vmem:[%s2079_s0 + $0x2b8] sm:$0xff] }
  0x40   :  { %1277 = vmatpush3.bf16.xpose.msra.mxu1 %v314_v0  ;;  %1338 = vmatprep.subr.msk.bf16.mxu0 %vm258_vm0, %v203_v63  ;;  %v425_v45 = vsel %vm258_vm0, %v209_v38, 0  ;;  %v216_v46 = vpack.c.bf16 %v149_v42, %v148_v41  ;;  %v101_v48 = vld [vmem:[%s2079_s0 + $0x248] sm:$0xff]  ;;  %v132_v49 = vld [vmem:[%s2079_s0 + $0x340] sm:$0xff]  ;;  %v146_v56 = vld [vmem:[%s2079_s0 + $0x3b0] sm:$0xff]  ;;  %v199_v59 = vpack.c.bf16 %v115_v55, %v114_v53 }
  0x41   :  { %1346 = vmatprep.subr.msk.bf16.mxu1 %vm258_vm0, %v219_v1  ;;  %v133_v50 = vld [vmem:[%s2079_s0 + $0x348] sm:$0xff]  ;;  %v192_v51 = vpack.c.bf16 %v101_v48, %v100_v47  ;;  %v147_v57 = vld [vmem:[%s2079_s0 + $0x3b8] sm:$0xff]  ;;  %v98_v62 = vld [vmem:[%s2079_s0 + $0x230] sm:$0xff] }
  0x42   :  { %v208_v52 = vpack.c.bf16 %v133_v50, %v132_v49  ;;  %v215_v61 = vpack.c.bf16 %v147_v57, %v146_v56  ;;  %v99_v63 = vld [vmem:[%s2079_s0 + $0x238] sm:$0xff]  ;;  %v130_v0 = vld [vmem:[%s2079_s0 + $0x330] sm:$0xff]  ;;  %v112_v4 = vld [vmem:[%s2079_s0 + $0x2a0] sm:$0xff] }
  0x43   :  { %v374_v58 = vsel %vm258_vm0, %v192_v51, 0  ;;  %v131_v1 = vld [vmem:[%s2079_s0 + $0x338] sm:$0xff]  ;;  %v191_v2 = vpack.c.bf16 %v99_v63, %v98_v62  ;;  %v113_v5 = vld [vmem:[%s2079_s0 + $0x2a8] sm:$0xff]  ;;  %v144_v6 = vld [vmem:[%s2079_s0 + $0x3a0] sm:$0xff] }
  0x44   :  { %v422_v60 = vsel %vm258_vm0, %v208_v52, 0  ;;  %v207_v3 = vpack.c.bf16 %v131_v1, %v130_v0  ;;  %v145_v7 = vld [vmem:[%s2079_s0 + $0x3a8] sm:$0xff]  ;;  %v198_v9 = vpack.c.bf16 %v113_v5, %v112_v4  ;;  %v96_v12 = vld [vmem:[%s2079_s0 + $0x220] sm:$0xff]  ;;  %v111_v20 = vld [vmem:[%s2079_s0 + $0x298] sm:$0xff] }
  0x45   :  { %v371_v8 = vsel %vm258_vm0, %v191_v2, 0  ;;  %v214_v11 = vpack.c.bf16 %v145_v7, %v144_v6  ;;  %v142_v21 = vld [vmem:[%s2079_s0 + $0x390] sm:$0xff]  ;;  %v143_v22 = vld [vmem:[%s2079_s0 + $0x398] sm:$0xff]  ;;  %v108_v34 = vld [vmem:[%s2079_s0 + $0x280] sm:$0xff] }
  0x46   :  { %1259 = vmatmul.mubr.msk.bf16.vlgmr.msra.gmra.mxu0 %vm258_vm0, %v1540_v54  ;;  %v419_v10 = vsel %vm258_vm0, %v207_v3, 0  ;;  %v213_v26 = vpack.c.bf16 %v143_v22, %v142_v21  ;;  %v94_v27 = vld [vmem:[%s2079_s0 + $0x210] sm:$0xff]  ;;  %v109_v35 = vld [vmem:[%s2079_s0 + $0x288] sm:$0xff]  ;;  %v140_v36 = vld [vmem:[%s2079_s0 + $0x380] sm:$0xff] }
  0x47   :  { %1279 = vmatmul.mubr.msk.bf16.vlgmr.msra.gmra.mxu1 %vm258_vm0, %v1540_v54  ;;  %1283 = vmatpush3.bf16.xpose.msra.mxu0 %v383_v13  ;;  %v97_v13 = vld [vmem:[%s2079_s0 + $0x228] sm:$0xff]  ;;  %v196_v39 = vpack.c.bf16 %v109_v35, %v108_v34  ;;  %v92_v42 = vld [vmem:[%s2079_s0 + $0x200] sm:$0xff] }
  0x48   :  { %1303 = vmatpush3.bf16.xpose.msra.mxu1 %v431_v15  ;;  %1260 = vmatprep.mubr.msk.bf16.mxu0 %vm258_vm0, %v1730_v14  ;;  %v128_v15 = vld [vmem:[%s2079_s0 + $0x320] sm:$0xff]  ;;  %v190_v17 = vpack.c.bf16 %v97_v13, %v96_v12  ;;  %v141_v37 = vld [vmem:[%s2079_s0 + $0x388] sm:$0xff] }
  0x49   :  { %1280 = vmatprep.mubr.msk.bf16.mxu1 %vm258_vm0, %v1730_v14  ;;  %1339 = vmatprep.subr.msk.bf16.mxu0 %vm258_vm0, %v202_v16  ;;  %v129_v16 = vld [vmem:[%s2079_s0 + $0x328] sm:$0xff]  ;;  %v212_v41 = vpack.c.bf16 %v141_v37, %v140_v36 }
  0x4a   :  { %1347 = vmatprep.subr.msk.bf16.mxu1 %vm258_vm0, %v218_v19  ;;  %v206_v18 = vpack.c.bf16 %v129_v16, %v128_v15  ;;  %v110_v19 = vld [vmem:[%s2079_s0 + $0x290] sm:$0xff]  ;;  %v368_v23 = vsel %vm258_vm0, %v190_v17, 0 }
  0x4b   :  { %v197_v24 = vpack.c.bf16 %v111_v20, %v110_v19 }
  0x4c   :  { %v416_v25 = vsel %vm258_vm0, %v206_v18, 0 }
  0x4e   :  { %1261 = vmatmul.mubr.msk.bf16.gmra.mxu0 %vm258_vm0, %v1730_v14 }
  0x4f   :  { %1281 = vmatmul.mubr.msk.bf16.gmra.mxu1 %vm258_vm0, %v1730_v14  ;;  %1285 = vmatpush3.bf16.xpose.msra.mxu0 %v380_v29  ;;  %v95_v29 = vld [vmem:[%s2079_s0 + $0x218] sm:$0xff] }
  0x50   :  { %1305 = vmatpush3.bf16.xpose.msra.mxu1 %v428_v31  ;;  %1340 = vmatprep.subr.msk.bf16.mxu0 %vm258_vm0, %v201_v30  ;;  %v126_v30 = vld [vmem:[%s2079_s0 + $0x310] sm:$0xff]  ;;  %v127_v31 = vld [vmem:[%s2079_s0 + $0x318] sm:$0xff] }
  0x51   :  { %1348 = vmatprep.subr.msk.bf16.mxu1 %vm258_vm0, %v217_v32  ;;  %1298 = vmatprep.mubr.msk.bf16.mxu0 %vm258_vm0, %v1540_v54  ;;  %v189_v32 = vpack.c.bf16 %v95_v29, %v94_v27  ;;  %v205_v33 = vpack.c.bf16 %v127_v31, %v126_v30 }
  0x52   :  { %1318 = vmatprep.mubr.msk.bf16.mxu1 %vm258_vm0, %v1540_v54 }
  0x53   :  { %v365_v38 = vsel %vm258_vm0, %v189_v32, 0  ;;  %v413_v40 = vsel %vm258_vm0, %v205_v33, 0 }
  0x57   :  { %1287 = vmatpush3.bf16.xpose.msra.mxu0 %v377_v43  ;;  %v93_v43 = vld [vmem:[%s2079_s0 + $0x208] sm:$0xff] }
  0x58   :  { %1307 = vmatpush3.bf16.xpose.msra.mxu1 %v425_v45  ;;  %1341 = vmatprep.subr.msk.bf16.mxu0 %vm258_vm0, %v200_v44  ;;  %v124_v44 = vld [vmem:[%s2079_s0 + $0x300] sm:$0xff]  ;;  %v125_v45 = vld [vmem:[%s2079_s0 + $0x308] sm:$0xff] }
  0x59   :  { %1349 = vmatprep.subr.msk.bf16.mxu1 %vm258_vm0, %v216_v46  ;;  %v188_v46 = vpack.c.bf16 %v93_v43, %v92_v42  ;;  %v204_v47 = vpack.c.bf16 %v125_v45, %v124_v44 }
  0x5b   :  { %v362_v48 = vsel %vm258_vm0, %v188_v46, 0  ;;  %v410_v49 = vsel %vm258_vm0, %v204_v47, 0  ;;  %v1974_v47 = vld [vmem:[%s2082_s3] sm:$0xff]  }
  0x5f   :  { %1289 = vmatpush3.bf16.xpose.msra.mxu0 %v374_v58 }
  0x60   :  { %1309 = vmatpush3.bf16.xpose.msra.mxu1 %v422_v60  ;;  %1342 = vmatprep.subr.msk.bf16.mxu0 %vm258_vm0, %v199_v59 }
  0x61   :  { %1350 = vmatprep.subr.msk.bf16.mxu1 %vm258_vm0, %v215_v61 }
  0x67   :  { %1291 = vmatpush3.bf16.xpose.msra.mxu0 %v371_v8 }
  0x68   :  { %1311 = vmatpush3.bf16.xpose.msra.mxu1 %v419_v10  ;;  %1343 = vmatprep.subr.msk.bf16.mxu0 %vm258_vm0, %v198_v9 }
  0x69   :  { %1351 = vmatprep.subr.msk.bf16.mxu1 %vm258_vm0, %v214_v11 }
  0x6f   :  { %1293 = vmatpush3.bf16.xpose.msra.mxu0 %v368_v23 }
  0x70   :  { %1313 = vmatpush3.bf16.xpose.msra.mxu1 %v416_v25  ;;  %1344 = vmatprep.subr.msk.bf16.mxu0 %vm258_vm0, %v197_v24 }
  0x71   :  { %1352 = vmatprep.subr.msk.bf16.mxu1 %vm258_vm0, %v213_v26 }
  0x77   :  { %1295 = vmatpush3.bf16.xpose.msra.mxu0 %v365_v38 }
  0x78   :  { %1315 = vmatpush3.bf16.xpose.msra.mxu1 %v413_v40  ;;  %1345 = vmatprep.subr.msk.bf16.mxu0 %vm258_vm0, %v196_v39 }
  0x79   :  { %1353 = vmatprep.subr.msk.bf16.mxu1 %vm258_vm0, %v212_v41 }
  0x7f   :  { %1297 = vmatpush3.bf16.xpose.msra.mxu0 %v362_v48  ;;  %v1985_v48 = vld [vmem:[%s2082_s3 + $0x8] sm:$0xff]  }
  0x80   :  { %1317 = vmatpush3.bf16.xpose.msra.mxu1 %v410_v49 }
  0x86   :  { %1299 = vmatmul.mubr.msk.bf16.vlgmr.msra.gmra.mxu0 %vm258_vm0, %v1540_v54 }
  0x87   :  { %1319 = vmatmul.mubr.msk.bf16.vlgmr.msra.gmra.mxu1 %vm258_vm0, %v1540_v54  ;;  %1300 = vmatprep.mubr.msk.bf16.mxu0 %vm258_vm0, %v1730_v14 }
  0x88   :  { %1320 = vmatprep.mubr.msk.bf16.mxu1 %vm258_vm0, %v1730_v14 }
  0x8e   :  { %1301 = vmatmul.mubr.msk.bf16.gmra.mxu0 %vm258_vm0, %v1730_v14  ;;  %v1949_v57 = vpop.permute.xlu1 %230 }
  0x8f   :  { %1321 = vmatmul.mubr.msk.bf16.gmra.mxu1 %vm258_vm0, %v1730_v14  ;;  %794 = vmatprep.mubr.bf16.mxu0 %v1384_v28 }
  0x90   :  { %847 = vmatprep.mubr.bf16.mxu1 %v1384_v28 }
  0x91   :  { %v1947_v55 = vpop.permute.xlu0 %240 }
  0x92   :  { %v1956_v3 = vpop.permute.xlu1 %235 }
  0xad   :  { %v1951_v14 = vpop.permute.xlu0 %245 }
 0x106   :  { %v491_v50 = vpop.f32.mrf.mxu0 }
 0x107   :  { %v544_v51 = vpop.f32.mrf.mxu1  ;;  %v492_v29 = vadd.f32 %v491_v50, %v1949_v57 }
 0x108   :  { %v493_v52 = vpop.f32.mrf.mxu0  ;;  %v545_v33 = vadd.f32 %v544_v51, %v1949_v57 }
 0x109   :  { %v546_v54 = vpop.f32.mrf.mxu1  ;;  %v494_v6 = vadd.f32 %v493_v52, %v1949_v57  ;;  %v669_v42 = vmax.f32 %v492_v29, 0.0 }
 0x10a   :  { %v495_v53 = vpop.f32.mrf.mxu0  ;;  %v547_v10 = vadd.f32 %v546_v54, %v1949_v57  ;;  %v671_v44 = vmax.f32 %v545_v33, 0.0 }
 0x10b   :  { %v548_v56 = vpop.f32.mrf.mxu1  ;;  %v496_v21 = vadd.f32 %v495_v53, %v1956_v3  ;;  %v670_v34 = vmax.f32 %v494_v6, 0.0 }
 0x10c   :  { %v497_v58 = vpop.f32.mrf.mxu0  ;;  %v549_v25 = vadd.f32 %v548_v56, %v1956_v3  ;;  %v672_v37 = vmax.f32 %v547_v10, 0.0 }
 0x10d   :  { %v550_v59 = vpop.f32.mrf.mxu1  ;;  %v498_v7 = vadd.f32 %v497_v58, %v1956_v3  ;;  %v677_v38 = vmax.f32 %v496_v21, 0.0 }
 0x10e   :  { %v501_v60 = vpop.f32.mrf.mxu0  ;;  %v551_v11 = vadd.f32 %v550_v59, %v1956_v3  ;;  %v679_v40 = vmax.f32 %v549_v25, 0.0 }
 0x10f   :  { %v554_v61 = vpop.f32.mrf.mxu1  ;;  %v502_v63 = vadd.f32 %v501_v60, %v1947_v55  ;;  %v678_v26 = vmax.f32 %v498_v7, 0.0  ;;  %v701_v45 = vpack.c.bf16 %v677_v38, %v669_v42 }
 0x110   :  { %v503_v62 = vpop.f32.mrf.mxu0  ;;  %v555_v2 = vadd.f32 %v554_v61, %v1947_v55  ;;  %v680_v30 = vmax.f32 %v551_v11, 0.0  ;;  %v703_v46 = vpack.c.bf16 %v679_v40, %v671_v44 }
 0x111   :  { %v504_v0 = vadd.f32 %v503_v62, %v1947_v55  ;;  %v556_v1 = vpop.f32.mrf.mxu1  ;;  %v685_v13 = vmax.f32 %v502_v63, 0.0  ;;  %v702_v41 = vpack.c.bf16 %v678_v26, %v670_v34 }
 0x112   :  { %v557_v4 = vadd.f32 %v556_v1, %v1947_v55  ;;  %v505_v5 = vpop.f32.mrf.mxu0  ;;  %v687_v20 = vmax.f32 %v555_v2, 0.0  ;;  %v704_v43 = vpack.c.bf16 %v680_v30, %v672_v37 }
 0x113   :  { %v558_v8 = vpop.f32.mrf.mxu1  ;;  %v506_v9 = vadd.f32 %v505_v5, %v1951_v14  ;;  %v686_v16 = vmax.f32 %v504_v0, 0.0 }
 0x114   :  { %v507_v12 = vpop.f32.mrf.mxu0  ;;  %v559_v15 = vadd.f32 %v558_v8, %v1951_v14  ;;  %v688_v22 = vmax.f32 %v557_v4, 0.0 }
 0x115   :  { %v508_v17 = vadd.f32 %v507_v12, %v1951_v14  ;;  %v560_v18 = vpop.f32.mrf.mxu1  ;;  %v693_v19 = vmax.f32 %v506_v9, 0.0 }
 0x116   :  { %v561_v23 = vadd.f32 %v560_v18, %v1951_v14  ;;  %v695_v24 = vmax.f32 %v559_v15, 0.0 }
 0x117   :  { %v694_v27 = vmax.f32 %v508_v17, 0.0  ;;  %v709_v32 = vpack.c.bf16 %v693_v19, %v685_v13 }
 0x118   :  { %v696_v31 = vmax.f32 %v561_v23, 0.0  ;;  %v711_v36 = vpack.c.bf16 %v695_v24, %v687_v20 }
 0x119   :  { %v710_v35 = vpack.c.bf16 %v694_v27, %v686_v16 }
 0x11a   :  { %v712_v39 = vpack.c.bf16 %v696_v31, %v688_v22 }
 0x11b   :  { %774 = vmatprep.subr.bf16.mxu0 %v710_v35 }
 0x11c   :  { %827 = vmatprep.subr.bf16.mxu1 %v712_v39  ;;  %775 = vmatpush1.bf16.msra.mxu0 %v709_v32 }
 0x11d   :  { %828 = vmatpush1.bf16.msra.mxu1 %v711_v36  ;;  %776 = vmatprep.subr.bf16.mxu0 %v702_v41 }
 0x11e   :  { %829 = vmatprep.subr.bf16.mxu1 %v704_v43 }
 0x120   :  { %777 = vmatpush1.bf16.msra.mxu0 %v701_v45 }
 0x121   :  { %830 = vmatpush1.bf16.msra.mxu1 %v703_v46 }
 0x123   :  { %1230 = vmatmul.mubr.msk.bf16.vlgmr.msra.gmra.mxu0 %vm755_vm1, %v1974_v47 }
 0x124   :  { %1232 = vmatmul.mubr.msk.bf16.vlgmr.msra.gmra.mxu1 %vm755_vm1, %v1974_v47  ;;  %804 = vmatprep.mubr.bf16.mxu0 %v1384_v28 }
 0x125   :  { %857 = vmatprep.mubr.bf16.mxu1 %v1384_v28 }
 0x12b   :  { %1231 = vmatmul.mubr.msk.bf16.gmra.mxu0 %vm755_vm1, %v1985_v48 }
 0x12c   :  { %1233 = vmatmul.mubr.msk.bf16.gmra.mxu1 %vm755_vm1, %v1985_v48  ;;  %900 = vmatprep.mubr.bf16.mxu0 %v1384_v28 }
 0x12d   :  { %953 = vmatprep.mubr.bf16.mxu1 %v1384_v28 }
 0x146   :  { %v597_v49 = vpop.f32.mrf.mxu0 }
 0x147   :  { %v650_v50 = vpop.f32.mrf.mxu1  ;;  %v598_v0 = vadd.f32 %v597_v49, %v1949_v57 }
 0x148   :  { %v599_v51 = vpop.f32.mrf.mxu0 }
 0x149   :  { %v652_v52 = vpop.f32.mrf.mxu1  ;;  %v600_v11 = vadd.f32 %v599_v51, %v1949_v57  ;;  %v673_v38 = vmax.f32 %v598_v0, 0.0 }
 0x14a   :  { %v601_v54 = vpop.f32.mrf.mxu0  ;;  %v653_v12 = vadd.f32 %v652_v52, %v1949_v57 }
 0x14b   :  { %v654_v53 = vpop.f32.mrf.mxu1  ;;  %v602_v17 = vadd.f32 %v601_v54, %v1956_v3  ;;  %v674_v30 = vmax.f32 %v600_v11, 0.0 }
 0x14c   :  { %v603_v56 = vpop.f32.mrf.mxu0  ;;  %v655_v18 = vadd.f32 %v654_v53, %v1956_v3  ;;  %v676_v33 = vmax.f32 %v653_v12, 0.0 }
 0x14d   :  { %v656_v58 = vpop.f32.mrf.mxu1  ;;  %v604_v1 = vadd.f32 %v603_v56, %v1956_v3  ;;  %v681_v34 = vmax.f32 %v602_v17, 0.0 }
 0x14e   :  { %v607_v59 = vpop.f32.mrf.mxu0  ;;  %v657_v6 = vadd.f32 %v656_v58, %v1956_v3  ;;  %v683_v36 = vmax.f32 %v655_v18, 0.0 }
 0x14f   :  { %v660_v60 = vpop.f32.mrf.mxu1  ;;  %v608_v7 = vadd.f32 %v607_v59, %v1947_v55  ;;  %v682_v21 = vmax.f32 %v604_v1, 0.0  ;;  %v705_v41 = vpack.c.bf16 %v681_v34, %v673_v38 }
 0x150   :  { %v609_v61 = vpop.f32.mrf.mxu0  ;;  %v661_v13 = vadd.f32 %v660_v60, %v1947_v55  ;;  %v684_v25 = vmax.f32 %v657_v6, 0.0 }
 0x151   :  { %v662_v62 = vpop.f32.mrf.mxu1  ;;  %v610_v2 = vadd.f32 %v609_v61, %v1947_v55  ;;  %v689_v26 = vmax.f32 %v608_v7, 0.0  ;;  %v706_v37 = vpack.c.bf16 %v682_v21, %v674_v30 }
 0x152   :  { %v611_v63 = vpop.f32.mrf.mxu0  ;;  %v663_v8 = vadd.f32 %v662_v62, %v1947_v55  ;;  %v651_v55 = vadd.f32 %v650_v50, %v1949_v57  ;;  %v691_v31 = vmax.f32 %v661_v13, 0.0  ;;  %v708_v39 = vpack.c.bf16 %v684_v25, %v676_v33  ;;  %v2023_v50 = vpop.permute.xlu1 %742 }
 0x153   :  { %v612_v4 = vadd.f32 %v611_v63, %v1951_v14  ;;  %v664_v5 = vpop.f32.mrf.mxu1  ;;  %v690_v22 = vmax.f32 %v610_v2, 0.0 }
 0x154   :  { %v665_v9 = vadd.f32 %v664_v5, %v1951_v14  ;;  %v613_v10 = vpop.f32.mrf.mxu0  ;;  %v692_v27 = vmax.f32 %v663_v8, 0.0  ;;  %v675_v40 = vmax.f32 %v651_v55, 0.0 }
 0x155   :  { %v614_v15 = vadd.f32 %v613_v10, %v1951_v14  ;;  %v666_v16 = vpop.f32.mrf.mxu1  ;;  %v697_v19 = vmax.f32 %v612_v4, 0.0 }
 0x156   :  { %v667_v20 = vadd.f32 %v666_v16, %v1951_v14  ;;  %v699_v23 = vmax.f32 %v665_v9, 0.0  ;;  %v707_v57 = vpack.c.bf16 %v683_v36, %v675_v40  ;;  %v2027_v59 = vpop.permute.xlu1 %732  ;;  %v2048_v40 = vld [vmem:[%s2084_s5] sm:$0xf]  ;;  %s1385_s5 = smov [#allocation2]  }
 0x157   :  { %v698_v24 = vmax.f32 %v614_v15, 0.0  ;;  %v713_v35 = vpack.c.bf16 %v697_v19, %v689_v26  ;;  %s1210_s10 = sshll.u32 %s1385_s5, 4  ;;  %s1211_s10 = int_to_ptr.vmem [resolvable:$true] %s1210_s10 }
 0x158   :  { %v700_v29 = vmax.f32 %v667_v20, 0.0  ;;  %v715_v14 = vpack.c.bf16 %v699_v23, %v691_v31  ;;  %s1362_s11 = scalar_lea.vmem %s1211_s10, 1024  ;;  %p1367_p1 = scmp.lt.s32.totalorder %s1211_s10, %s1211_s10 }
 0x159   :  { %v714_v32 = vpack.c.bf16 %v698_v24, %v690_v22  ;;  %p1363_p0 = scmp.ne.s32.totalorder %s1211_s10, %s1362_s11  ;;  %p1368_p2 = scmp.lt.s32.totalorder %s1362_s11, %s1362_s11 }
 0x15a   :  { %v716_v3 = vpack.c.bf16 %v700_v29, %v692_v27 }
 0x15b   :  { %880 = vmatprep.subr.bf16.mxu0 %v714_v32  ;;  %p1369_p3 = por %p1368_p2, %p1367_p1 }
 0x15c   :  { %933 = vmatprep.subr.bf16.mxu1 %v716_v3  ;;  %881 = vmatpush1.bf16.msra.mxu0 %v713_v35 }
 0x15d   :  { %934 = vmatpush1.bf16.msra.mxu1 %v715_v14  ;;  %882 = vmatprep.subr.bf16.mxu0 %v706_v37  ;;  %p1370_p4 = pnand %p1369_p3, %p1363_p0 }
 0x15e   :  { %935 = vmatprep.subr.bf16.mxu1 %v708_v39 }
 0x160   :  { %883 = vmatpush1.bf16.msra.mxu0 %v705_v41 }
 0x161   :  { %936 = vmatpush1.bf16.msra.mxu1 %v707_v57 }
 0x163   :  { %1234 = vmatmul.mubr.msk.bf16.vlgmr.msra.gmra.mxu0 %vm755_vm1, %v1974_v47 }
 0x164   :  { %1236 = vmatmul.mubr.msk.bf16.vlgmr.msra.gmra.mxu1 %vm755_vm1, %v1974_v47  ;;  %910 = vmatprep.mubr.bf16.mxu0 %v1384_v28  ;;  %v2021_v47 = vpop.permute.xlu0 %737 }
 0x165   :  { %963 = vmatprep.mubr.bf16.mxu1 %v1384_v28 }
 0x16b   :  { %1235 = vmatmul.mubr.msk.bf16.gmra.mxu0 %vm755_vm1, %v1985_v48 }
 0x16c   :  { %1237 = vmatmul.mubr.msk.bf16.gmra.mxu1 %vm755_vm1, %v1985_v48  ;;  %1064 = vmatprep.mubr.bf16.mxu0 %v1384_v28  ;;  %v2025_v48 = vpop.permute.xlu0 %727 }
 0x16d   :  { %1105 = vmatprep.mubr.bf16.mxu1 %v1384_v28 }
 0x1e3   :  { %v796_v42 = vpop.f32.mrf.mxu0 }
 0x1e4   :  { %v849_v43 = vpop.f32.mrf.mxu1  ;;  %v797_v61 = vadd.f32 %v796_v42, %v2025_v48 }
 0x1e5   :  { %v798_v44 = vpop.f32.mrf.mxu0  ;;  %v850_v26 = vadd.f32 %v849_v43, %v2025_v48 }
 0x1e6   :  { %v851_v45 = vpop.f32.mrf.mxu1  ;;  %v799_v8 = vadd.f32 %v798_v44, %v2025_v48  ;;  %v974_v36 = vmax.f32 %v797_v61, 0.0 }
 0x1e7   :  { %v800_v46 = vpop.f32.mrf.mxu0  ;;  %v852_v9 = vadd.f32 %v851_v45, %v2025_v48  ;;  %v976_v14 = vmax.f32 %v850_v26, 0.0 }
 0x1e8   :  { %v853_v49 = vpop.f32.mrf.mxu1  ;;  %v801_v13 = vadd.f32 %v800_v46, %v2027_v59  ;;  %v975_v27 = vmax.f32 %v799_v8, 0.0 }
 0x1e9   :  { %v802_v51 = vpop.f32.mrf.mxu0  ;;  %v854_v15 = vadd.f32 %v853_v49, %v2027_v59  ;;  %v977_v30 = vmax.f32 %v852_v9, 0.0 }
 0x1ea   :  { %v855_v52 = vpop.f32.mrf.mxu1  ;;  %v803_v62 = vadd.f32 %v802_v51, %v2027_v59  ;;  %v982_v31 = vmax.f32 %v801_v13, 0.0 }
 0x1eb   :  { %v806_v54 = vpop.f32.mrf.mxu0  ;;  %v856_v2 = vadd.f32 %v855_v52, %v2027_v59  ;;  %v984_v34 = vmax.f32 %v854_v15, 0.0 }
 0x1ec   :  { %v859_v53 = vpop.f32.mrf.mxu1  ;;  %v807_v4 = vadd.f32 %v806_v54, %v2021_v47  ;;  %v983_v18 = vmax.f32 %v803_v62, 0.0  ;;  %v1006_v38 = vpack.c.bf16 %v982_v31, %v974_v36 }
 0x1ed   :  { %v808_v56 = vpop.f32.mrf.mxu0  ;;  %v860_v10 = vadd.f32 %v859_v53, %v2021_v47  ;;  %v985_v22 = vmax.f32 %v856_v2, 0.0  ;;  %v1008_v39 = vpack.c.bf16 %v984_v34, %v976_v14 }
 0x1ee   :  { %v861_v58 = vpop.f32.mrf.mxu1  ;;  %v809_v63 = vadd.f32 %v808_v56, %v2021_v47  ;;  %v990_v23 = vmax.f32 %v807_v4, 0.0  ;;  %v1007_v35 = vpack.c.bf16 %v983_v18, %v975_v27 }
 0x1ef   :  { %v810_v60 = vpop.f32.mrf.mxu0  ;;  %v862_v5 = vadd.f32 %v861_v58, %v2021_v47  ;;  %v992_v29 = vmax.f32 %v860_v10, 0.0  ;;  %v1009_v37 = vpack.c.bf16 %v985_v22, %v977_v30 }
 0x1f0   :  { %v811_v0 = vadd.f32 %v810_v60, %v2023_v50  ;;  %v863_v1 = vpop.f32.mrf.mxu1  ;;  %v991_v19 = vmax.f32 %v809_v63, 0.0 }
 0x1f1   :  { %v864_v6 = vadd.f32 %v863_v1, %v2023_v50  ;;  %v812_v7 = vpop.f32.mrf.mxu0  ;;  %v993_v24 = vmax.f32 %v862_v5, 0.0 }
 0x1f2   :  { %v813_v11 = vadd.f32 %v812_v7, %v2023_v50  ;;  %v865_v12 = vpop.f32.mrf.mxu1  ;;  %v998_v16 = vmax.f32 %v811_v0, 0.0 }
 0x1f3   :  { %v866_v17 = vadd.f32 %v865_v12, %v2023_v50  ;;  %v1000_v20 = vmax.f32 %v864_v6, 0.0 }
 0x1f4   :  { %v999_v21 = vmax.f32 %v813_v11, 0.0  ;;  %v1014_v32 = vpack.c.bf16 %v998_v16, %v990_v23 }
 0x1f5   :  { %v1001_v25 = vmax.f32 %v866_v17, 0.0  ;;  %v1016_v3 = vpack.c.bf16 %v1000_v20, %v992_v29 }
 0x1f6   :  { %v1015_v55 = vpack.c.bf16 %v999_v21, %v991_v19 }
 0x1f7   :  { %v1017_v33 = vpack.c.bf16 %v1001_v25, %v993_v24 }
 0x1f8   :  { %1044 = vmatprep.subr.bf16.mxu0 %v1015_v55 }
 0x1f9   :  { %1085 = vmatprep.subr.bf16.mxu1 %v1017_v33  ;;  %1045 = vmatpush1.bf16.msra.mxu0 %v1014_v32 }
 0x1fa   :  { %1086 = vmatpush1.bf16.msra.mxu1 %v1016_v3  ;;  %1046 = vmatprep.subr.bf16.mxu0 %v1007_v35  ;;  %v1027_v35 = vpop.permute.xlu0 %1026 }
 0x1fb   :  { %1087 = vmatprep.subr.bf16.mxu1 %v1009_v37 }
 0x1fd   :  { %1047 = vmatpush1.bf16.msra.mxu0 %v1006_v38 }
 0x1fe   :  { %1088 = vmatpush1.bf16.msra.mxu1 %v1008_v39 }
 0x200   :  { %1238 = vmatmul.mubr.msk.bf16.vlgmr.msra.gmra.mxu0 %vm755_vm1, %v2048_v40 }
 0x201   :  { %1239 = vmatmul.mubr.msk.bf16.vlgmr.msra.gmra.mxu1 %vm755_vm1, %v2048_v40  ;;  %1146 = vmatprep.mubr.bf16.mxu0 %v1384_v28 }
 0x202   :  { %1187 = vmatprep.mubr.bf16.mxu1 %v1384_v28 }
 0x223   :  { %v902_v41 = vpop.f32.mrf.mxu0 }
 0x224   :  { %v955_v57 = vpop.f32.mrf.mxu1  ;;  %v903_v58 = vadd.f32 %v902_v41, %v2025_v48 }
 0x225   :  { %v904_v42 = vpop.f32.mrf.mxu0 }
 0x226   :  { %v957_v43 = vpop.f32.mrf.mxu1  ;;  %v905_v5 = vadd.f32 %v904_v42, %v2025_v48  ;;  %v978_v31 = vmax.f32 %v903_v58, 0.0 }
 0x227   :  { %v906_v44 = vpop.f32.mrf.mxu0  ;;  %v958_v6 = vadd.f32 %v957_v43, %v2025_v48 }
 0x228   :  { %v959_v45 = vpop.f32.mrf.mxu1  ;;  %v907_v10 = vadd.f32 %v906_v44, %v2027_v59  ;;  %v979_v23 = vmax.f32 %v905_v5, 0.0 }
 0x229   :  { %v908_v46 = vpop.f32.mrf.mxu0  ;;  %v960_v11 = vadd.f32 %v959_v45, %v2027_v59  ;;  %v981_v26 = vmax.f32 %v958_v6, 0.0 }
 0x22a   :  { %v961_v49 = vpop.f32.mrf.mxu1  ;;  %v909_v60 = vadd.f32 %v908_v46, %v2027_v59  ;;  %v986_v27 = vmax.f32 %v907_v10, 0.0 }
 0x22b   :  { %v912_v51 = vpop.f32.mrf.mxu0  ;;  %v962_v63 = vadd.f32 %v961_v49, %v2027_v59  ;;  %v988_v55 = vmax.f32 %v960_v11, 0.0 }
 0x22c   :  { %v965_v52 = vpop.f32.mrf.mxu1  ;;  %v913_v0 = vadd.f32 %v912_v51, %v2021_v47  ;;  %v987_v15 = vmax.f32 %v909_v60, 0.0  ;;  %v1010_v34 = vpack.c.bf16 %v986_v27, %v978_v31 }
 0x22d   :  { %v914_v54 = vpop.f32.mrf.mxu0  ;;  %v966_v7 = vadd.f32 %v965_v52, %v2021_v47  ;;  %v989_v19 = vmax.f32 %v962_v63, 0.0 }
 0x22e   :  { %v967_v53 = vpop.f32.mrf.mxu1  ;;  %v915_v61 = vadd.f32 %v914_v54, %v2021_v47  ;;  %v994_v20 = vmax.f32 %v913_v0, 0.0  ;;  %v1011_v30 = vpack.c.bf16 %v987_v15, %v979_v23 }
 0x22f   :  { %v916_v56 = vpop.f32.mrf.mxu0  ;;  %v968_v1 = vadd.f32 %v967_v53, %v2021_v47  ;;  %v956_v47 = vadd.f32 %v955_v57, %v2025_v48  ;;  %v996_v24 = vmax.f32 %v966_v7, 0.0  ;;  %v1013_v32 = vpack.c.bf16 %v989_v19, %v981_v26 }
 0x230   :  { %v917_v28 = vadd.f32 %v916_v56, %v2023_v50  ;;  %v969_v62 = vpop.f32.mrf.mxu1  ;;  %v995_v16 = vmax.f32 %v915_v61, 0.0 }
 0x231   :  { %v970_v2 = vadd.f32 %v969_v62, %v2023_v50  ;;  %v918_v4 = vpop.f32.mrf.mxu0  ;;  %v997_v21 = vmax.f32 %v968_v1, 0.0  ;;  %v980_v33 = vmax.f32 %v956_v47, 0.0 }
 0x232   :  { %v919_v8 = vadd.f32 %v918_v4, %v2023_v50  ;;  %v971_v9 = vpop.f32.mrf.mxu1  ;;  %v1002_v12 = vmax.f32 %v917_v28, 0.0 }
 0x233   :  { %v972_v13 = vadd.f32 %v971_v9, %v2023_v50  ;;  %v1004_v17 = vmax.f32 %v970_v2, 0.0  ;;  %v1012_v48 = vpack.c.bf16 %v988_v55, %v980_v33 }
 0x234   :  { %v1003_v18 = vmax.f32 %v919_v8, 0.0  ;;  %v1018_v29 = vpack.c.bf16 %v1002_v12, %v994_v20 }
 0x235   :  { %v1005_v22 = vmax.f32 %v972_v13, 0.0  ;;  %v1020_v50 = vpack.c.bf16 %v1004_v17, %v996_v24 }
 0x236   :  { %v1019_v25 = vpack.c.bf16 %v1003_v18, %v995_v16 }
 0x237   :  { %v1021_v59 = vpack.c.bf16 %v1005_v22, %v997_v21 }
 0x238   :  { %1126 = vmatprep.subr.bf16.mxu0 %v1019_v25 }
 0x239   :  { %1167 = vmatprep.subr.bf16.mxu1 %v1021_v59  ;;  %1127 = vmatpush1.bf16.msra.mxu0 %v1018_v29 }
 0x23a   :  { %1168 = vmatpush1.bf16.msra.mxu1 %v1020_v50  ;;  %1128 = vmatprep.subr.bf16.mxu0 %v1011_v30 }
 0x23b   :  { %1169 = vmatprep.subr.bf16.mxu1 %v1013_v32 }
 0x23d   :  { %1129 = vmatpush1.bf16.msra.mxu0 %v1010_v34 }
 0x23e   :  { %1170 = vmatpush1.bf16.msra.mxu1 %v1012_v48 }
 0x240   :  { %1240 = vmatmul.mubr.msk.bf16.vlgmr.msra.gmra.mxu0 %vm755_vm1, %v2048_v40 }
 0x241   :  { %1241 = vmatmul.mubr.msk.bf16.vlgmr.msra.gmra.mxu1 %vm755_vm1, %v2048_v40 }
 0x2c0   :  { %v1066_v3 = vpop.f32.mrf.mxu0 }
 0x2c1   :  { %v1067_v36 = vadd.f32 %v1066_v3, %v1027_v35  ;;  %v1107_v37 = vpop.f32.mrf.mxu1 }
 0x2c2   :  { %v1108_v14 = vadd.f32 %v1107_v37, %v1027_v35  ;;  %v1068_v38 = vpop.f32.mrf.mxu0 }
 0x2c3   :  { %1196 = vst [vmem:[#allocation2] sm:$0xff] %v1067_v36  ;;  %v1069_v39 = vadd.f32 %v1068_v38, %v1027_v35  ;;  %v1109_v41 = vpop.f32.mrf.mxu1 }
 0x2c4   :  { %1198 = vst [vmem:[#allocation2 + $0x10] sm:$0xff] %v1108_v14  ;;  %v1110_v57 = vadd.f32 %v1109_v41, %v1027_v35  ;;  %v1070_v42 = vpop.f32.mrf.mxu0 }
 0x2c5   :  { %1197 = vst [vmem:[#allocation2 + $0x8] sm:$0xff] %v1069_v39  ;;  %v1111_v43 = vpop.f32.mrf.mxu1 }
 0x2c6   :  { %1199 = vst [vmem:[#allocation2 + $0x18] sm:$0xff] %v1110_v57  ;;  %v1071_v44 = vpop.f32.mrf.mxu0 }
 0x2c7   :  { %v1112_v45 = vpop.f32.mrf.mxu1 }
 0x300   :  { %v1148_v46 = vpop.f32.mrf.mxu0 }
 0x301   :  { %v1149_v49 = vadd.f32 %v1148_v46, %v1027_v35  ;;  %v1189_v40 = vpop.f32.mrf.mxu1 }
 0x302   :  { %v1190_v51 = vadd.f32 %v1189_v40, %v1027_v35  ;;  %v1150_v52 = vpop.f32.mrf.mxu0 }
 0x303   :  { %1200 = vst [vmem:[#allocation2 + $0x20] sm:$0xff] %v1149_v49  ;;  %v1151_v54 = vadd.f32 %v1150_v52, %v1027_v35  ;;  %v1191_v53 = vpop.f32.mrf.mxu1 }
 0x304   :  { %1202 = vst [vmem:[#allocation2 + $0x30] sm:$0xff] %v1190_v51  ;;  %v1192_v56 = vadd.f32 %v1191_v53, %v1027_v35  ;;  %v1152_v58 = vpop.f32.mrf.mxu0 }
 0x305   :  { %1201 = vst [vmem:[#allocation2 + $0x28] sm:$0xff] %v1151_v54  ;;  %v1193_v60 = vpop.f32.mrf.mxu1 }
 0x306   :  { %1203 = vst [vmem:[#allocation2 + $0x38] sm:$0xff] %v1192_v56  ;;  %v1153_v61 = vpop.f32.mrf.mxu0 }
 0x307   :  { %v1194_v28 = vpop.f32.mrf.mxu1 }
 0x308   :  { %1373 = shalt.err (!%p1370_p4)
}
 0x309   :  { %1213 = dma.vmem_to_hbm [thread:$0]  %s1211_s10, 1024, %s2086_s7, [#allocation3]  }
 0x30a   :  { %1382 = dma.done.wait [#allocation3], 1024  }
 0x30b   :  { %1383 = vsyncadd [#allocation3], 4294966272 }
 0x30c   :  { %1217 = vsyncpa [#allocation3], 1 }

</bundles_post_ra>
